<compile_context>
chip_gen: v7x
topology: tpu7x:2x2x1
jax: 0.10.0
libtpu: 0.0.40
codegen_flags: <defaults>
</compile_context>

<pallas_src>
import functools
import numpy as np
import jax
import jax.numpy as jnp
from jax import lax
from jax.experimental import pallas as pl
from jax.experimental.pallas import tpu as pltpu

# Matmul precision for the (rows, W) @ (W, W) butterfly.  None (backend
# default) is exact whenever the vertical sums/diffs are bf16-representable
# (e.g. integer-valued or bf16 inputs); set to jax.lax.Precision.HIGHEST for
# strict f32 accuracy on arbitrary float inputs (MXU is idle, so the extra
# passes are free until W gets into the multi-thousand range).
_MATMUL_PRECISION = None


def _haar_col_matrix(W):
    """(W, W) f32 matrix folding the horizontal pair butterfly and the /4 scale.

    Columns [0, W2) compute (even + odd)/4 of each horizontal pair, columns
    [W2, W) compute (even - odd)/4, so  rowsum @ M = [LL | HL]  and
    rowdiff @ M = [LH | HH].
    """
    W2 = W // 2
    m = np.zeros((W, W), dtype=np.float32)
    j = np.arange(W2)
    m[2 * j, j] = 0.25
    m[2 * j + 1, j] = 0.25
    m[2 * j, W2 + j] = 0.25
    m[2 * j + 1, W2 + j] = -0.25
    return jnp.asarray(m)


def _haar_kernel(x_ref, m_ref, o_ref):
    # x_ref: (tile_r, 2*W)   -- row r holds [image row 2i | image row 2i+1]
    # m_ref: (W, W)          -- constant column-butterfly matrix (see above)
    # o_ref: (4, tile_r, W2) -- Haar components LL, HL, LH, HH
    W2 = o_ref.shape[-1]
    W = 2 * W2
    x = x_ref[...].astype(jnp.float32)
    xe = x[:, :W]                      # image rows 2i      (contiguous slice)
    xo = x[:, W:]                      # image rows 2i + 1  (contiguous slice)
    rs = xe + xo                       # vertical sum  (VPU, exact f32)
    rd = xe - xo                       # vertical diff (VPU, exact f32)
    m = m_ref[...]
    res_s = jnp.dot(rs, m, preferred_element_type=jnp.float32,
                    precision=_MATMUL_PRECISION)   # [LL | HL]
    res_d = jnp.dot(rd, m, preferred_element_type=jnp.float32,
                    precision=_MATMUL_PRECISION)   # [LH | HH]
    dt = o_ref.dtype
    o_ref[0] = res_s[:, :W2].astype(dt)   # LL
    o_ref[1] = res_s[:, W2:].astype(dt)   # HL
    o_ref[2] = res_d[:, :W2].astype(dt)   # LH
    o_ref[3] = res_d[:, W2:].astype(dt)   # HH


def _pick_tile_rows(n_rows, w, itemsize, target_bytes=1 << 20):
    """Largest multiple-of-8 divisor of n_rows whose input block is <= ~1 MiB.

    1 MiB per (input) block ~= the measured 85%-of-roofline point; output
    block is the same size, so double-buffered VMEM stays around 4 MiB.
    Falls back to the smallest multiple-of-8 divisor, then to the full
    extent (full-extent blocks satisfy the (8,128) rule unconditionally).
    """
    row_bytes = max(1, 2 * w * itemsize)
    max_rows = max(1, target_bytes // row_bytes)
    best = None
    for t in range(1, n_rows + 1):
        if n_rows % t:
            continue
        if t <= max_rows and (t % 8 == 0 or t == n_rows):
            best = t
    if best is not None:
        return best
    mult8 = [t for t in range(8, n_rows + 1, 8) if n_rows % t == 0]
    return min(mult8) if mult8 else n_rows


@functools.partial(jax.jit, static_argnames=("channel_in",))
def haar_downsampling_fwd(x, channel_in):
    """Forward HaarDownsampling (rev=False). x: (B, C, H, W) NCHW."""
    B, C, H, W = x.shape
    assert C == channel_in
    assert H % 2 == 0 and W % 2 == 0, "spatial dims must be even"
    H2, W2 = H // 2, W // 2
    N = C * H2                           # one slab row per (channel, out-row)

    # Contiguous (free) reshape: each row packs one vertical pair of image rows
    # side by side along lanes -> single 1x HBM read, lane-dense (2*W wide).
    x_rows = x.reshape(B, N, 2 * W)
    m = _haar_col_matrix(W)
    # TODO(synk): for very wide images (W >~ 2k) the (W, W) constant should be
    # tiled along its output columns (and the op becomes MXU-bound anyway);
    # typical HaarDownsampling widths keep it well under a few MiB.

    tile_r = _pick_tile_rows(N, W, x.dtype.itemsize)
    grid = (B, N // tile_r)

    out = pl.pallas_call(
        _haar_kernel,
        grid=grid,
        in_specs=[
            pl.BlockSpec((None, tile_r, 2 * W), lambda b, r: (b, r, 0)),
            pl.BlockSpec((W, W), lambda b, r: (0, 0)),   # constant, fetched once
        ],
        out_specs=pl.BlockSpec((None, 4, tile_r, W2), lambda b, r: (b, 0, r, 0)),
        out_shape=jax.ShapeDtypeStruct((B, 4, N, W2), x.dtype),
        compiler_params=pltpu.CompilerParams(
            dimension_semantics=("parallel", "parallel")),
    )(x_rows, m)

    # Contiguous (free) reshape -> PyTorch channel order k*C + c.
    return out.reshape(B, 4 * C, H2, W2)


class HaarDownsampling:
    """Thin module-like wrapper mirroring the PyTorch class (forward only)."""

    def __init__(self, channel_in):
        self.channel_in = channel_in
        self.elements = None
        self.last_jac = None

    def __call__(self, x, rev=False):
        B, C, H, W = x.shape
        self.elements = C * H * W
        if not rev:
            self.last_jac = self.elements / 4 * np.log(1 / 16.0)
            return haar_downsampling_fwd(x, self.channel_in)
        # TODO(synk): rev=True inverse (conv_transpose) branch not implemented.
        raise NotImplementedError("HaarDownsampling rev=True is not implemented")


# ----------------------------- reference path ------------------------------

def _haar_weights(channel_in, dtype):
    w = np.ones((4, 1, 2, 2), dtype=np.float32)
    w[1, 0, 0, 1] = -1
    w[1, 0, 1, 1] = -1
    w[2, 0, 1, 0] = -1
    w[2, 0, 1, 1] = -1
    w[3, 0, 1, 0] = -1
    w[3, 0, 0, 1] = -1
    w = np.concatenate([w] * channel_in, axis=0)          # (4*C, 1, 2, 2)
    return jnp.asarray(w, dtype=dtype)


def _reference_fwd(x, channel_in):
    """Pure-JAX reference mirroring the PyTorch F.conv2d path."""
    B, C, H, W = x.shape
    w = _haar_weights(channel_in, x.dtype)
    out = lax.conv_general_dilated(
        x, w, window_strides=(2, 2), padding="VALID",
        dimension_numbers=("NCHW", "OIHW", "NCHW"),
        feature_group_count=channel_in) / 4.0
    out = out.reshape(B, channel_in, 4, H // 2, W // 2)
    out = jnp.transpose(out, (0, 2, 1, 3, 4))
    return out.reshape(B, channel_in * 4, H // 2, W // 2)


if __name__ == "__main__":
    key = jax.random.PRNGKey(0)
    B, C, H, W = 2, 4, 16, 16
    # Integer-valued test data keeps every intermediate exactly representable
    # on the MXU path (and in the conv reference), so this check is independent
    # of the backend's default f32 matmul precision.
    x = jnp.round(jax.random.normal(key, (B, C, H, W), dtype=jnp.float32) * 16.0)

    mod = HaarDownsampling(C)
    out = jax.block_until_ready(mod(x))
    ref = jax.block_until_ready(_reference_fwd(x, C))

    assert out.shape == (B, 4 * C, H // 2, W // 2), out.shape
    np.testing.assert_allclose(np.asarray(out), np.asarray(ref),
                               rtol=1e-5, atol=1e-5)
    print("KERNEL_OK")
</pallas_src>

<mosaic_0001>
module attributes {stable_mosaic.version = 11 : i64} {
  func.func @_haar_kernel(%arg0: i32, %arg1: i32, %arg2: memref<1x32x32xf32, #tpu.memory_space<vmem>>, %arg3: memref<16x16xf32, #tpu.memory_space<vmem>>, %arg4: memref<1x4x32x8xf32, #tpu.memory_space<vmem>>) attributes {dimension_semantics = [#tpu.dimension_semantics<parallel>, #tpu.dimension_semantics<parallel>], iteration_bounds = array<i64: 2, 1>, scalar_prefetch = 0 : i64, scratch_operands = 0 : i64, tpu.core_type = #tpu.core_type<tc>, window_params = [{transform_indices = @transform_0, window_bounds = array<i64: 1, 32, 32>}, {pipeline_mode = #tpu.pipeline_mode<synchronous>, transform_indices = @transform_1, window_bounds = array<i64: 16, 16>}, {transform_indices = @transform_2, window_bounds = array<i64: 1, 4, 32, 8>}]} {
    %c0 = arith.constant 0 : index
    %c0_0 = arith.constant 0 : index
    %c0_1 = arith.constant 0 : index
    %0 = vector.load %arg2[%c0, %c0_0, %c0_1] : memref<1x32x32xf32, #tpu.memory_space<vmem>>, vector<1x32x32xf32>
    %1 = vector.shape_cast %0 : vector<1x32x32xf32> to vector<32x32xf32>
    %2 = vector.extract_strided_slice %1 {offsets = [0, 0], sizes = [32, 16], strides = [1, 1]} : vector<32x32xf32> to vector<32x16xf32>
    %3 = vector.extract_strided_slice %1 {offsets = [0, 16], sizes = [32, 16], strides = [1, 1]} : vector<32x32xf32> to vector<32x16xf32>
    %4 = arith.addf %2, %3 : vector<32x16xf32>
    %5 = arith.subf %2, %3 : vector<32x16xf32>
    %c0_2 = arith.constant 0 : index
    %c0_3 = arith.constant 0 : index
    %6 = vector.load %arg3[%c0_2, %c0_3] : memref<16x16xf32, #tpu.memory_space<vmem>>, vector<16x16xf32>
    %cst = arith.constant dense<0.000000e+00> : vector<32x16xf32>
    %7 = tpu.matmul %4, %6, %cst {dimension_numbers = #tpu.dot_dimension_numbers<[1], [0], [0], [1], [0, 0, 1, 1], [], []>} : vector<32x16xf32>, vector<16x16xf32>, vector<32x16xf32> -> vector<32x16xf32>
    %cst_4 = arith.constant dense<0.000000e+00> : vector<32x16xf32>
    %8 = tpu.matmul %5, %6, %cst_4 {dimension_numbers = #tpu.dot_dimension_numbers<[1], [0], [0], [1], [0, 0, 1, 1], [], []>} : vector<32x16xf32>, vector<16x16xf32>, vector<32x16xf32> -> vector<32x16xf32>
    %9 = vector.extract_strided_slice %7 {offsets = [0, 0], sizes = [32, 8], strides = [1, 1]} : vector<32x16xf32> to vector<32x8xf32>
    %c0_5 = arith.constant 0 : index
    %c0_6 = arith.constant 0 : index
    %c0_7 = arith.constant 0 : index
    %c0_8 = arith.constant 0 : index
    %10 = vector.load %arg4[%c0_5, %c0_6, %c0_7, %c0_8] : memref<1x4x32x8xf32, #tpu.memory_space<vmem>>, vector<1x1x32x8xf32>
    %11 = vector.shape_cast %10 : vector<1x1x32x8xf32> to vector<32x8xf32>
    %12 = vector.shape_cast %9 : vector<32x8xf32> to vector<1x1x32x8xf32>
    tpu.vector_store %arg4[%c0_5, %c0_6, %c0_7, %c0_8], %12 {strides = array<i32>} : memref<1x4x32x8xf32, #tpu.memory_space<vmem>>, vector<1x1x32x8xf32>,
    %13 = vector.extract_strided_slice %7 {offsets = [0, 8], sizes = [32, 8], strides = [1, 1]} : vector<32x16xf32> to vector<32x8xf32>
    %c0_9 = arith.constant 0 : index
    %c1 = arith.constant 1 : index
    %c0_10 = arith.constant 0 : index
    %c0_11 = arith.constant 0 : index
    %14 = vector.load %arg4[%c0_9, %c1, %c0_10, %c0_11] : memref<1x4x32x8xf32, #tpu.memory_space<vmem>>, vector<1x1x32x8xf32>
    %15 = vector.shape_cast %14 : vector<1x1x32x8xf32> to vector<32x8xf32>
    %16 = vector.shape_cast %13 : vector<32x8xf32> to vector<1x1x32x8xf32>
    tpu.vector_store %arg4[%c0_9, %c1, %c0_10, %c0_11], %16 {strides = array<i32>} : memref<1x4x32x8xf32, #tpu.memory_space<vmem>>, vector<1x1x32x8xf32>,
    %17 = vector.extract_strided_slice %8 {offsets = [0, 0], sizes = [32, 8], strides = [1, 1]} : vector<32x16xf32> to vector<32x8xf32>
    %c0_12 = arith.constant 0 : index
    %c2 = arith.constant 2 : index
    %c0_13 = arith.constant 0 : index
    %c0_14 = arith.constant 0 : index
    %18 = vector.load %arg4[%c0_12, %c2, %c0_13, %c0_14] : memref<1x4x32x8xf32, #tpu.memory_space<vmem>>, vector<1x1x32x8xf32>
    %19 = vector.shape_cast %18 : vector<1x1x32x8xf32> to vector<32x8xf32>
    %20 = vector.shape_cast %17 : vector<32x8xf32> to vector<1x1x32x8xf32>
    tpu.vector_store %arg4[%c0_12, %c2, %c0_13, %c0_14], %20 {strides = array<i32>} : memref<1x4x32x8xf32, #tpu.memory_space<vmem>>, vector<1x1x32x8xf32>,
    %21 = vector.extract_strided_slice %8 {offsets = [0, 8], sizes = [32, 8], strides = [1, 1]} : vector<32x16xf32> to vector<32x8xf32>
    %c0_15 = arith.constant 0 : index
    %c3 = arith.constant 3 : index
    %c0_16 = arith.constant 0 : index
    %c0_17 = arith.constant 0 : index
    %22 = vector.load %arg4[%c0_15, %c3, %c0_16, %c0_17] : memref<1x4x32x8xf32, #tpu.memory_space<vmem>>, vector<1x1x32x8xf32>
    %23 = vector.shape_cast %22 : vector<1x1x32x8xf32> to vector<32x8xf32>
    %24 = vector.shape_cast %21 : vector<32x8xf32> to vector<1x1x32x8xf32>
    tpu.vector_store %arg4[%c0_15, %c3, %c0_16, %c0_17], %24 {strides = array<i32>} : memref<1x4x32x8xf32, #tpu.memory_space<vmem>>, vector<1x1x32x8xf32>,
    return
  }
  func.func @transform_0(%arg0: i32, %arg1: i32) -> (i32, i32, i32) {
    %c0_i32 = arith.constant 0 : i32
    %c0_i32_0 = arith.constant 0 : i32
    return %arg0, %arg1, %c0_i32 : i32, i32, i32
  }
  func.func @transform_1(%arg0: i32, %arg1: i32) -> (i32, i32) {
    %c0_i32 = arith.constant 0 : i32
    %c0_i32_0 = arith.constant 0 : i32
    %c0_i32_1 = arith.constant 0 : i32
    return %c0_i32, %c0_i32_0 : i32, i32
  }
  func.func @transform_2(%arg0: i32, %arg1: i32) -> (i32, i32, i32, i32) {
    %c0_i32 = arith.constant 0 : i32
    %c0_i32_0 = arith.constant 0 : i32
    %c0_i32_1 = arith.constant 0 : i32
    return %arg0, %c0_i32, %arg1, %c0_i32_0 : i32, i32, i32, i32
  }
}

</mosaic_0001>

<bundles_post_ra>
// kernel: haar_downsampling_fwd.1
= control target key start
LH: loop header
LB: loop body
LE: loop exit
PB: predicated region body
PF: predicated region fallthrough
CT: control target
= control target key end

     0   :  { %s687_s9 = smov 0   ;;  %s689_s10 = smov 0   ;;  %s772_s0 = inlined_call_operand.vmem [shape: f32[2,32,32], index: 0, kind: input, shape index: {}]   ;;  %s773_s1 = inlined_call_operand.vmem [shape: f32[16,16], index: 1, kind: input, shape index: {}]   ;;  %s774_s2 = inlined_call_operand.vmem [shape: f32[2,4,32,8], index: 2, kind: output, shape index: {}]  }
   0x1   :  { %s691_s11 = smov 0  }
   0x2 LB: > { %s24_s12 = sadd.s32 1, %s664_s10  ;;  %p551_p0 = scmp.ge.s32.totalorder %s668_s11, 1  ;;  %s668_s11 = sphi %s691_s11, %s12_s11   ;;  %s664_s10 = sphi %s689_s10, %s776_s10   ;;  %s660_s9 = sphi %s687_s9, %s775_s9  }
   0x3   : > { %p26_p1 = scmp.ge.s32.totalorder %s24_s12, 2  ;;  %p133_p2 = scmp.lt.s32.totalorder %s668_s11, 3 }
   0x5   : > { %s778_s12 = smov (%p26_p1, %s24_s12), 0  ;;  %p134_p3 = pnand %p551_p0, %p133_p2 }
   0x6   : > { %p164_p4 = scmp.lt.s32.totalorder (!%p134_p3), %s660_s9, 1  ;;  %v211_v0 = vld [vmem:[%s773_s1] sm:$0xff] (!%p134_p3)  ;;  %v212_v1 = vld [vmem:[%s773_s1 + $0x8] sm:$0xff] (!%p134_p3)  ;;  %s670_s21 = smov (!%p134_p3), 112   ;;  %vm213_vm0 = vcmask (!%p134_p3), 130048   ;;  %vm408_vm1 = vcmask (!%p134_p3), 64512  }
   0x7   : > { %137 = sbr.rel (%p134_p3) target bundleno = 480 (0x1e0), region = 28  ;;  %v612_v2 = vpack.c.bf16 (!%p134_p3), %v212_v1, %v211_v0  ;;  %s671_s26 = smov (!%p134_p3), 120  }
   0x9   : > { %613 = vmatprep.subr.bf16.mxu0 (!%p134_p3), %v612_v2  ;;  %617 = vmatprep.subr.bf16.mxu1 (!%p134_p3), %v612_v2 }
   0xa   : > { %615 = vmatpush3.bf16.msra.mxu0 (!%p134_p3), %v612_v2  ;;  %619 = vmatpush3.bf16.msra.mxu1 (!%p134_p3), %v612_v2 }
   0xe   : > { %s780_s9 = smov (!%p164_p4, %s660_s9), 1 }
   0xf   : > { %s578_s17 = sshll.u32 %s780_s9, 5  ;;  %s579_s22 = sshll.u32 %s780_s9, 7 }
  0x10   : > { %s171_s20 = scalar_lea.vmem %s772_s0, %s578_s17  ;;  %s729_s25 = scalar_lea.vmem %s774_s2, %s579_s22 }
  0x11   : > { %v183_v3 = vld [vmem:[%s171_s20] sm:$0xff]  ;;  %v185_v4 = vld [vmem:[%s171_s20 + $0x10] sm:$0xff]  ;;  %v184_v5 = vld [vmem:[%s171_s20 + $0x8] sm:$0xff] }
  0x12   : > { %191 = vrot.lane.b32.xlu0 %v183_v3, %s670_s21  ;;  %195 = vrot.lane.b32.xlu1 %v185_v4, %s670_s21  ;;  %v186_v6 = vld [vmem:[%s171_s20 + $0x18] sm:$0xff] }
  0x16   : > { %193 = vrot.lane.b32.xlu0 %v184_v5, %s670_s21  ;;  %197 = vrot.lane.b32.xlu1 %v186_v6, %s670_s21 }
  0x84   : > { %v192_v7 = vpop.permute.xlu0 %191  ;;  %v196_v8 = vpop.permute.xlu1 %195 }
  0x85   : > { %v203_v9 = vadd.f32 %v192_v7, %v183_v3  ;;  %v207_v10 = vsub.f32 %v183_v3, %v192_v7  ;;  %v205_v12 = vadd.f32 %v196_v8, %v185_v4  ;;  %v209_v13 = vsub.f32 %v185_v4, %v196_v8 }
  0x87   : > { %596 = vmatprep.mubr.msk.f32.mxu0 %vm213_vm0, %v203_v9  ;;  %606 = vmatprep.mubr.msk.f32.mxu1 %vm213_vm0, %v207_v10 }
  0x88   : > { %v194_v11 = vpop.permute.xlu0 %193  ;;  %v198_v14 = vpop.permute.xlu1 %197 }
  0x89   : > { %v204_v15 = vadd.f32 %v194_v11, %v184_v5  ;;  %v208_v16 = vsub.f32 %v184_v5, %v194_v11  ;;  %v206_v17 = vadd.f32 %v198_v14, %v186_v6  ;;  %v210_v18 = vsub.f32 %v186_v6, %v198_v14 }
  0x8b   : > { %597 = vmatmul.mubr.msk.f32.vlgmr.msra.gmra.mrb[0].mxu0 %vm213_vm0, %v204_v15  ;;  %607 = vmatmul.mubr.msk.f32.vlgmr.msra.gmra.mrb[0].mxu1 %vm213_vm0, %v208_v16 }
  0x8c   : > { %599 = vmatprep.mubr.msk.f32.mxu0 %vm213_vm0, %v205_v12  ;;  %609 = vmatprep.mubr.msk.f32.mxu1 %vm213_vm0, %v209_v13 }
  0x8f   : > { %600 = vmatmul.mubr.msk.f32.gmra.mrb[2].mxu0 %vm213_vm0, %v206_v17  ;;  %610 = vmatmul.mubr.msk.f32.gmra.mrb[2].mxu1 %vm213_vm0, %v210_v18 }
 0x15e   : > { %v598_v19 = vpop.f32.mrb[0].mxu0  ;;  %v608_v20 = vpop.f32.mrb[0].mxu1 }
 0x15f   : > { %410 = vst.msk [vmem:[%s729_s25 + $0x8] sm:$0xff] %vm408_vm1, %v598_v19  ;;  %569 = vst.msk [vmem:[%s729_s25 + $0x48] sm:$0xff] %vm408_vm1, %v608_v20  ;;  %419 = vrot.lane.b32.xlu1 %v598_v19, %s671_s26  ;;  %v292_v21 = vpop.f32.mrb[1].mxu0  ;;  %v389_v22 = vpop.f32.mrb[1].mxu1 }
 0x160   : > { %409 = vst.msk [vmem:[%s729_s25] sm:$0xff] %vm408_vm1, %v292_v21  ;;  %568 = vst.msk [vmem:[%s729_s25 + $0x40] sm:$0xff] %vm408_vm1, %v389_v22  ;;  %417 = vrot.lane.b32.xlu0 %v292_v21, %s671_s26 }
 0x162   : > { %v601_v23 = vpop.f32.mrb[2].mxu0  ;;  %v611_v24 = vpop.f32.mrb[2].mxu1 }
 0x163   : > { %445 = vrot.lane.b32.xlu1 %v608_v20, %s671_s26  ;;  %412 = vst.msk [vmem:[%s729_s25 + $0x18] sm:$0xff] %vm408_vm1, %v601_v23  ;;  %571 = vst.msk [vmem:[%s729_s25 + $0x58] sm:$0xff] %vm408_vm1, %v611_v24  ;;  %v302_v25 = vpop.f32.mrb[3].mxu0  ;;  %v399_v26 = vpop.f32.mrb[3].mxu1 }
 0x164   : > { %443 = vrot.lane.b32.xlu0 %v389_v22, %s671_s26  ;;  %411 = vst.msk [vmem:[%s729_s25 + $0x10] sm:$0xff] %vm408_vm1, %v302_v25  ;;  %570 = vst.msk [vmem:[%s729_s25 + $0x50] sm:$0xff] %vm408_vm1, %v399_v26 }
 0x167   : > { %423 = vrot.lane.b32.xlu1 %v601_v23, %s671_s26 }
 0x168   : > { %421 = vrot.lane.b32.xlu0 %v302_v25, %s671_s26 }
 0x16b   : > { %449 = vrot.lane.b32.xlu1 %v611_v24, %s671_s26 }
 0x16c   : > { %447 = vrot.lane.b32.xlu0 %v399_v26, %s671_s26 }
 0x1d1   : > { %v420_v27 = vpop.permute.xlu1 %419 }
 0x1d2   : > { %565 = vst.msk [vmem:[%s729_s25 + $0x28] sm:$0xff] %vm408_vm1, %v420_v27  ;;  %v418_v28 = vpop.permute.xlu0 %417 }
 0x1d3   : > { %564 = vst.msk [vmem:[%s729_s25 + $0x20] sm:$0xff] %vm408_vm1, %v418_v28 }
 0x1d5   : > { %v446_v29 = vpop.permute.xlu1 %445 }
 0x1d6   : > { %573 = vst.msk [vmem:[%s729_s25 + $0x68] sm:$0xff] %vm408_vm1, %v446_v29  ;;  %v444_v30 = vpop.permute.xlu0 %443 }
 0x1d7   : > { %572 = vst.msk [vmem:[%s729_s25 + $0x60] sm:$0xff] %vm408_vm1, %v444_v30 }
 0x1d9   : > { %v424_v31 = vpop.permute.xlu1 %423 }
 0x1da   : > { %567 = vst.msk [vmem:[%s729_s25 + $0x38] sm:$0xff] %vm408_vm1, %v424_v31  ;;  %v422_v32 = vpop.permute.xlu0 %421 }
 0x1db   : > { %566 = vst.msk [vmem:[%s729_s25 + $0x30] sm:$0xff] %vm408_vm1, %v422_v32 }
 0x1dd   : > { %v450_v33 = vpop.permute.xlu1 %449 }
 0x1de   : > { %575 = vst.msk [vmem:[%s729_s25 + $0x78] sm:$0xff] %vm408_vm1, %v450_v33  ;;  %v448_v34 = vpop.permute.xlu0 %447 }
 0x1df   : > { %574 = vst.msk [vmem:[%s729_s25 + $0x70] sm:$0xff] %vm408_vm1, %v448_v34 }
 0x1e0 PF: > { %s12_s11 = sadd.s32 1, %s668_s11   ;;  %s775_s9 = smov %s664_s10 }
 0x1e1   : > { %p9_p5 = scmp.ge.s32.totalorder %s12_s11, 4   ;;  %s776_s10 = smov %s778_s12 }
 0x1e3   :  { %11 = sbr.rel (!%p9_p5) target bundleno = 2 (0x2), region = 61 }

</bundles_post_ra>
